<compile_context>
chip_gen: v7x
topology: tpu7x:2x2x1
jax: 0.10.0
libtpu: 0.0.40
codegen_flags: <defaults>
</compile_context>

<pallas_src>
import functools

import jax
import jax.numpy as jnp
from jax.experimental import pallas as pl
from jax.experimental.pallas import tpu as pltpu

_NEG = -1e30  # bias for padded logit columns: exp underflows to exactly 0 in f32


def _round_up(x, m):
    return (x + m - 1) // m * m


def _cdiv(a, b):
    return (a + b - 1) // b


# ---------------------------------------------------------------------------
# Kernel: one grid step == one (batch_tile, t_chunk) slab of the recurrence
# ---------------------------------------------------------------------------
def _rnn_chunk_kernel(x_ref,       # (1, Tc*Bt, inp)   cdt, chunk inputs (t-major rows)
                      w_x_ref,     # (inp, HP)         cdt, input rows of [W_i2h^T|W_i2o^T], 0-padded cols
                      cat_b_ref,   # (Bt, HP)          f32, cat@W_cat + b_io per batch row (0-padded cols)
                      w_h_ref,     # (HP, HP)          f32, hidden rows embedded at [0:hid, 0:hid+op]
                      w_o2o_ref,   # (HP, OPP)         cdt, W_o2o^T embedded, 0-padded
                      b_o2o_ref,   # (1, OPP)          f32, padded cols = -1e30
                      h0_ref,      # (Bt, HP)          f32, initial hidden in cols [0:hid]
                      out_ref,     # (1, Tc*Bt, OPP)   out_dtype, per-step log-softmax
                      hT_ref,      # (Bt, HP)          f32, hidden carry / final hidden (resident over chunks)
                      xio_scr,     # VMEM (Tc*Bt, HP)  f32, batched input projection
                      *, t_chunk, batch_tile, seq_len, compute_dtype, out_dtype):
    c = pl.program_id(1)  # time-chunk axis (innermost, "arbitrary")

    @pl.when(c == 0)
    def _():
        hT_ref[...] = h0_ref[...]

    # -- Phase 1 (non-recurrent): input projection for the whole chunk -------
    xio_scr[...] = jnp.dot(x_ref[0], w_x_ref[...],
                           preferred_element_type=jnp.float32)

    w_h = w_h_ref[...]
    w_o2o = w_o2o_ref[...]
    b_o2o = b_o2o_ref[...]
    cat_b = cat_b_ref[...]

    # -- Phase 2: serial recurrence over the chunk (hidden carried in vregs) --
    def step(t, h):
        r0 = pl.multiple_of(t * batch_tile, batch_tile)
        rows = pl.ds(r0, batch_tile)

        # ho == cat(hidden_new, output) lane-padded to HP; only cols [0:hid]
        # of h contribute through w_h (rows >= hid are zero).
        ho = (xio_scr[rows, :] + cat_b
              + jnp.dot(h, w_h, preferred_element_type=jnp.float32))

        o2 = (jnp.dot(ho.astype(compute_dtype), w_o2o,
                      preferred_element_type=jnp.float32) + b_o2o)

        # TODO(synk): Dropout(p=0.1) is identity in eval mode; training-mode
        # masking would need pltpu.prng_seed / pltpu.prng_random_bits.

        # log_softmax(dim=1) in f32; padded cols (bias -1e30) contribute 0.
        m = jnp.max(o2, axis=1, keepdims=True)
        s = o2 - m
        lse = jnp.log(jnp.sum(jnp.exp(s), axis=1, keepdims=True))
        out_ref[0, rows, :] = (s - lse).astype(out_dtype)

        valid = (c * t_chunk + t) < seq_len     # skip carry update on T padding
        return jnp.where(valid, ho, h)

    hT_ref[...] = jax.lax.fori_loop(0, t_chunk, step, hT_ref[...])


# ---------------------------------------------------------------------------
# One-time parameter packing (transpose / fuse / pad) -- NOT per forward call
# ---------------------------------------------------------------------------
def pack_params(params, *, n_categories, inp_size, hid_size, op_size,
                compute_dtype=jnp.bfloat16):
    hidop = hid_size + op_size
    hidop_pad = _round_up(hidop, 128)
    op_pad = _round_up(op_size, 128)

    # Fused i2h + i2o weight, transposed: (n_cat + inp + hid, hid + op).
    w_io = jnp.concatenate([params["w_i2h"].T, params["w_i2o"].T], axis=1)
    w_cat = w_io[:n_categories].astype(jnp.float32)            # (n_cat, hidop)
    b_io = jnp.concatenate([params["b_i2h"], params["b_i2o"]]).astype(jnp.float32)

    w_x = jnp.zeros((inp_size, hidop_pad), jnp.float32)
    w_x = w_x.at[:, :hidop].set(w_io[n_categories:n_categories + inp_size])

    # Hidden weight embedded so the full padded ho can be fed back (rows>=hid are 0).
    w_h = jnp.zeros((hidop_pad, hidop_pad), jnp.float32)
    w_h = w_h.at[:hid_size, :hidop].set(w_io[n_categories + inp_size:])

    w_o2o = jnp.zeros((hidop_pad, op_pad), jnp.float32)
    w_o2o = w_o2o.at[:hidop, :op_size].set(params["w_o2o"].T)
    b_o2o = jnp.full((1, op_pad), _NEG, jnp.float32)
    b_o2o = b_o2o.at[0, :op_size].set(params["b_o2o"].astype(jnp.float32))

    return {
        "w_x": w_x.astype(compute_dtype),     # (inp, HP)  bf16 MXU operand
        "w_cat": w_cat,                       # (n_cat, hidop) f32, used in wrapper
        "b_io": b_io,                         # (hidop,)   f32, used in wrapper
        "w_h": w_h,                           # (HP, HP)   f32 (no hidden-state drift)
        "w_o2o": w_o2o.astype(compute_dtype), # (HP, OPP)  bf16
        "b_o2o": b_o2o,                       # (1, OPP)   f32
        "dims": (n_categories, inp_size, hid_size, op_size, hidop_pad, op_pad),
        "compute_dtype": compute_dtype,
    }


# ---------------------------------------------------------------------------
# Fused-sequence forward: runs T steps of NameGeneratorModule.forward
# ---------------------------------------------------------------------------
def name_generator_sequence(category, inputs, hidden0, packed, *,
                            batch_tile=None, t_chunk=32, out_dtype=jnp.float32):
    """inputs: (T, B, inp). Returns (log_probs (T, B, op), final hidden (B, hid))."""
    n_cat, inp, hid, op, HP, OPP = packed["dims"]
    cdt = packed["compute_dtype"]
    T, B, _ = inputs.shape

    # ---- tiling choices -----------------------------------------------------
    B8 = _round_up(B, 8)
    if batch_tile is None:
        n_bt = _cdiv(B8, 256)                         # <=256 rows/tile fills the MXU
        batch_tile = _round_up(_cdiv(B8, n_bt), 8)    # >=2 tiles for large B (v7x TCs)
    b_tiles = _cdiv(B8, batch_tile)
    B_pad = b_tiles * batch_tile

    Tc = min(T, t_chunk)                              # chunk T to bound VMEM (v7x: 64 MiB)
    n_chunks = _cdiv(T, Tc)
    T_pad = n_chunks * Tc
    rows = Tc * batch_tile

    # ---- host-side layout plumbing (pure XLA, once per call) ----------------
    x = inputs.astype(cdt)
    x = jnp.pad(x, ((0, T_pad - T), (0, B_pad - B), (0, 0)))
    # (T_pad, B_pad, inp) -> (n_chunks*b_tiles, Tc*Bt, inp), t-major rows per slab
    x = (x.reshape(n_chunks, Tc, b_tiles, batch_tile, inp)
           .transpose(0, 2, 1, 3, 4)
           .reshape(n_chunks * b_tiles, rows, inp))

    # Time-independent category projection folded with b_io into a per-row bias.
    cat_bias = category.astype(jnp.float32) @ packed["w_cat"] + packed["b_io"]
    cat_bias = jnp.pad(cat_bias, ((0, B_pad - B), (0, HP - (hid + op))))

    h0 = jnp.pad(hidden0.astype(jnp.float32), ((0, B_pad - B), (0, HP - hid)))

    kernel = functools.partial(
        _rnn_chunk_kernel, t_chunk=Tc, batch_tile=batch_tile, seq_len=T,
        compute_dtype=cdt, out_dtype=out_dtype)

    slab_map = lambda b, c: (c * b_tiles + b, 0, 0)

    out_raw, hT = pl.pallas_call(
        kernel,
        out_shape=(
            jax.ShapeDtypeStruct((n_chunks * b_tiles, rows, OPP), out_dtype),
            jax.ShapeDtypeStruct((B_pad, HP), jnp.float32),
        ),
        grid_spec=pltpu.PrefetchScalarGridSpec(
            num_scalar_prefetch=0,
            grid=(b_tiles, n_chunks),
            in_specs=[
                pl.BlockSpec((1, rows, inp),   slab_map),
                pl.BlockSpec((inp, HP),        lambda b, c: (0, 0)),  # resident
                pl.BlockSpec((batch_tile, HP), lambda b, c: (b, 0)),  # per-batch bias
                pl.BlockSpec((HP, HP),         lambda b, c: (0, 0)),  # resident
                pl.BlockSpec((HP, OPP),        lambda b, c: (0, 0)),  # resident
                pl.BlockSpec((1, OPP),         lambda b, c: (0, 0)),  # resident
                pl.BlockSpec((batch_tile, HP), lambda b, c: (b, 0)),
            ],
            out_specs=(
                pl.BlockSpec((1, rows, OPP),   slab_map),
                pl.BlockSpec((batch_tile, HP), lambda b, c: (b, 0)),  # hidden carry
            ),
            scratch_shapes=[pltpu.VMEM((rows, HP), jnp.float32)],
        ),
        compiler_params=pltpu.CompilerParams(
            # batch tiles independent (v7x 2nd TC); chunk axis carries hidden state
            dimension_semantics=("parallel", "arbitrary")),
    )(x, packed["w_x"], cat_bias, packed["w_h"], packed["w_o2o"],
      packed["b_o2o"], h0)

    # Un-permute back to (T, B, op); padded lanes / rows / steps sliced away.
    out = (out_raw.reshape(n_chunks, b_tiles, Tc, batch_tile, OPP)
                  .transpose(0, 2, 1, 3, 4)
                  .reshape(T_pad, B_pad, OPP)[:T, :B, :op]).astype(jnp.float32)
    return out, hT[:B, :hid]


def name_generator_forward(category, inp, hidden, packed):
    """Single-step API matching NameGeneratorModule.forward (eval mode)."""
    out, h_new = name_generator_sequence(category, inp[None], hidden, packed)
    return out[0], h_new


# ---------------------------------------------------------------------------
# Reference (pure JAX, f32) and PyTorch-style init
# ---------------------------------------------------------------------------
def _ref_sequence(category, inputs, hidden0, params):
    def step(h, x_t):
        inp_comb = jnp.concatenate((category, x_t, h), axis=1)
        h_new = inp_comb @ params["w_i2h"].T + params["b_i2h"]
        o = inp_comb @ params["w_i2o"].T + params["b_i2o"]
        o2 = jnp.concatenate((h_new, o), axis=1) @ params["w_o2o"].T + params["b_o2o"]
        return h_new, jax.nn.log_softmax(o2, axis=1)
    hT, outs = jax.lax.scan(step, hidden0, inputs)
    return outs, hT


def init_params(key, n_categories, inp_size, hid_size, op_size):
    in_comb = n_categories + inp_size + hid_size
    in_o2o = hid_size + op_size
    ks = jax.random.split(key, 6)

    def u(k, shape, fan_in):
        bound = 1.0 / jnp.sqrt(jnp.float32(fan_in))
        return jax.random.uniform(k, shape, jnp.float32, -bound, bound)

    return {
        "w_i2h": u(ks[0], (hid_size, in_comb), in_comb),
        "b_i2h": u(ks[1], (hid_size,), in_comb),
        "w_i2o": u(ks[2], (op_size, in_comb), in_comb),
        "b_i2o": u(ks[3], (op_size,), in_comb),
        "w_o2o": u(ks[4], (op_size, in_o2o), in_o2o),
        "b_o2o": u(ks[5], (op_size,), in_o2o),
    }


if __name__ == "__main__":
    # Small shapes consistent with the module; reference script has n_categories = 0.
    B, T = 2, 8
    n_categories, inp_size, hid_size, op_size = 0, 16, 32, 16

    key = jax.random.PRNGKey(0)
    k_inp, k_par = jax.random.split(key, 2)

    params = init_params(k_par, n_categories, inp_size, hid_size, op_size)
    packed = pack_params(params, n_categories=n_categories, inp_size=inp_size,
                         hid_size=hid_size, op_size=op_size)

    category = jnp.zeros((B, n_categories), jnp.float32)
    inputs = jax.random.normal(k_inp, (T, B, inp_size), jnp.float32)
    hidden0 = jnp.zeros((B, hid_size), jnp.float32)  # initHidden()

    # Fused-sequence forward (T steps, one pallas_call, chunked time loop in-kernel)
    outs, h_final = name_generator_sequence(category, inputs, hidden0, packed)
    jax.block_until_ready((outs, h_final))

    # Single-step forward (original module API)
    out1, h1 = name_generator_forward(category, inputs[0], hidden0, packed)
    jax.block_until_ready((out1, h1))

    # --- checks ---
    assert outs.shape == (T, B, op_size) and h_final.shape == (B, hid_size)
    assert out1.shape == (B, op_size) and h1.shape == (B, hid_size)

    row_sums = jnp.exp(outs).sum(axis=-1)           # log-softmax rows exp-sum to 1
    assert bool(jnp.allclose(row_sums, 1.0, atol=1e-4))

    ref_outs, ref_h = _ref_sequence(category, inputs, hidden0, params)
    assert bool(jnp.allclose(outs, ref_outs, atol=5e-2))     # bf16 MXU / f32 accumulate
    assert bool(jnp.allclose(h_final, ref_h, atol=5e-2))
    assert bool(jnp.allclose(out1, ref_outs[0], atol=5e-2))
    assert bool(jnp.allclose(
        h1, _ref_sequence(category, inputs[:1], hidden0, params)[1], atol=5e-2))

    print("KERNEL_OK")
</pallas_src>

<mosaic_0001>
module attributes {stable_mosaic.version = 11 : i64} {
  func.func @_rnn_chunk_kernel(%arg0: i32, %arg1: i32, %arg2: memref<1x64x16xbf16, #tpu.memory_space<vmem>>, %arg3: memref<16x128xbf16, #tpu.memory_space<vmem>>, %arg4: memref<8x128xf32, #tpu.memory_space<vmem>>, %arg5: memref<128x128xf32, #tpu.memory_space<vmem>>, %arg6: memref<128x128xbf16, #tpu.memory_space<vmem>>, %arg7: memref<1x128xf32, #tpu.memory_space<vmem>>, %arg8: memref<8x128xf32, #tpu.memory_space<vmem>>, %arg9: memref<1x64x128xf32, #tpu.memory_space<vmem>>, %arg10: memref<8x128xf32, #tpu.memory_space<vmem>>, %arg11: memref<64x128xf32, #tpu.memory_space<vmem>>) attributes {dimension_semantics = [#tpu.dimension_semantics<parallel>, #tpu.dimension_semantics<arbitrary>], iteration_bounds = array<i64: 1, 1>, scalar_prefetch = 0 : i64, scratch_operands = 1 : i64, tpu.core_type = #tpu.core_type<tc>, window_params = [{transform_indices = @transform_0, window_bounds = array<i64: 1, 64, 16>}, {pipeline_mode = #tpu.pipeline_mode<synchronous>, transform_indices = @transform_1, window_bounds = array<i64: 16, 128>}, {transform_indices = @transform_2, window_bounds = array<i64: 8, 128>}, {pipeline_mode = #tpu.pipeline_mode<synchronous>, transform_indices = @transform_3, window_bounds = array<i64: 128, 128>}, {pipeline_mode = #tpu.pipeline_mode<synchronous>, transform_indices = @transform_4, window_bounds = array<i64: 128, 128>}, {pipeline_mode = #tpu.pipeline_mode<synchronous>, transform_indices = @transform_5, window_bounds = array<i64: 1, 128>}, {transform_indices = @transform_6, window_bounds = array<i64: 8, 128>}, {transform_indices = @transform_7, window_bounds = array<i64: 1, 64, 128>}, {transform_indices = @transform_8, window_bounds = array<i64: 8, 128>}]} {
    %c0_i32 = arith.constant 0 : i32
    %0 = arith.cmpi eq, %arg1, %c0_i32 : i32
    %1 = arith.extui %0 : i1 to i32
    %c0_i32_0 = arith.constant 0 : i32
    %2 = arith.cmpi ne, %1, %c0_i32_0 : i32
    scf.if %2 {
      %c0_21 = arith.constant 0 : index
      %c0_22 = arith.constant 0 : index
      %16 = vector.load %arg8[%c0_21, %c0_22] : memref<8x128xf32, #tpu.memory_space<vmem>>, vector<8x128xf32>
      %c0_23 = arith.constant 0 : index
      %c0_24 = arith.constant 0 : index
      %17 = vector.load %arg10[%c0_23, %c0_24] : memref<8x128xf32, #tpu.memory_space<vmem>>, vector<8x128xf32>
      tpu.vector_store %arg10[%c0_23, %c0_24], %16 {strides = array<i32>} : memref<8x128xf32, #tpu.memory_space<vmem>>, vector<8x128xf32>,
    } else {
    }
    %c0 = arith.constant 0 : index
    %c0_1 = arith.constant 0 : index
    %c0_2 = arith.constant 0 : index
    %3 = vector.load %arg2[%c0, %c0_1, %c0_2] : memref<1x64x16xbf16, #tpu.memory_space<vmem>>, vector<1x64x16xbf16>
    %4 = vector.shape_cast %3 : vector<1x64x16xbf16> to vector<64x16xbf16>
    %c0_3 = arith.constant 0 : index
    %c0_4 = arith.constant 0 : index
    %5 = vector.load %arg3[%c0_3, %c0_4] : memref<16x128xbf16, #tpu.memory_space<vmem>>, vector<16x128xbf16>
    %cst = arith.constant dense<0.000000e+00> : vector<64x128xf32>
    %6 = tpu.matmul %4, %5, %cst {dimension_numbers = #tpu.dot_dimension_numbers<[1], [0], [0], [1], [0, 0, 1, 1], [], []>} : vector<64x16xbf16>, vector<16x128xbf16>, vector<64x128xf32> -> vector<64x128xf32>
    %c0_5 = arith.constant 0 : index
    %c0_6 = arith.constant 0 : index
    %7 = vector.load %arg11[%c0_5, %c0_6] : memref<64x128xf32, #tpu.memory_space<vmem>>, vector<64x128xf32>
    tpu.vector_store %arg11[%c0_5, %c0_6], %6 {strides = array<i32>} : memref<64x128xf32, #tpu.memory_space<vmem>>, vector<64x128xf32>,
    %c0_7 = arith.constant 0 : index
    %c0_8 = arith.constant 0 : index
    %8 = vector.load %arg5[%c0_7, %c0_8] : memref<128x128xf32, #tpu.memory_space<vmem>>, vector<128x128xf32>
    %c0_9 = arith.constant 0 : index
    %c0_10 = arith.constant 0 : index
    %9 = vector.load %arg6[%c0_9, %c0_10] : memref<128x128xbf16, #tpu.memory_space<vmem>>, vector<128x128xbf16>
    %c0_11 = arith.constant 0 : index
    %c0_12 = arith.constant 0 : index
    %10 = vector.load %arg7[%c0_11, %c0_12] : memref<1x128xf32, #tpu.memory_space<vmem>>, vector<1x128xf32>
    %c0_13 = arith.constant 0 : index
    %c0_14 = arith.constant 0 : index
    %11 = vector.load %arg4[%c0_13, %c0_14] : memref<8x128xf32, #tpu.memory_space<vmem>>, vector<8x128xf32>
    %c0_15 = arith.constant 0 : index
    %c0_16 = arith.constant 0 : index
    %12 = vector.load %arg10[%c0_15, %c0_16] : memref<8x128xf32, #tpu.memory_space<vmem>>, vector<8x128xf32>
    %c0_i32_17 = arith.constant 0 : i32
    %c8_i32 = arith.constant 8 : i32
    %13 = arith.addi %c0_i32_17, %c8_i32 : i32
    %c1_i32 = arith.constant 1 : i32
    %14 = scf.for %arg12 = %c0_i32_17 to %13 step %c1_i32 iter_args(%arg13 = %12) -> (vector<8x128xf32>)  : i32 {
      %c8_i32_21 = arith.constant 8 : i32
      %16 = arith.muli %arg12, %c8_i32_21 : i32
      %17 = tpu.assume_multiple %16, 8 : i32
      %18 = arith.index_cast %17 : i32 to index
      %c0_22 = arith.constant 0 : index
      %19 = vector.load %arg11[%18, %c0_22] : memref<64x128xf32, #tpu.memory_space<vmem>>, vector<8x128xf32>
      %20 = arith.addf %19, %11 : vector<8x128xf32>
      %cst_23 = arith.constant dense<0.000000e+00> : vector<8x128xf32>
      %21 = tpu.matmul %arg13, %8, %cst_23 {dimension_numbers = #tpu.dot_dimension_numbers<[1], [0], [0], [1], [0, 0, 1, 1], [], []>} : vector<8x128xf32>, vector<128x128xf32>, vector<8x128xf32> -> vector<8x128xf32>
      %22 = arith.addf %20, %21 : vector<8x128xf32>
      %23 = arith.truncf %22 : vector<8x128xf32> to vector<8x128xbf16>
      %cst_24 = arith.constant dense<0.000000e+00> : vector<8x128xf32>
      %24 = tpu.matmul %23, %9, %cst_24 {dimension_numbers = #tpu.dot_dimension_numbers<[1], [0], [0], [1], [0, 0, 1, 1], [], []>} : vector<8x128xbf16>, vector<128x128xbf16>, vector<8x128xf32> -> vector<8x128xf32>
      %25 = vector.broadcast %10 : vector<1x128xf32> to vector<8x128xf32>
      %26 = arith.addf %24, %25 : vector<8x128xf32>
      %cst_25 = arith.constant dense<0xFF800000> : vector<8xf32>
      %27 = vector.multi_reduction <maximumf>, %26, %cst_25 [1] : vector<8x128xf32> to vector<8xf32>
      %28 = vector.shape_cast %27 : vector<8xf32> to vector<8x1xf32>
      %29 = vector.broadcast %28 : vector<8x1xf32> to vector<8x128xf32>
      %30 = arith.subf %26, %29 : vector<8x128xf32>
      %31 = math.exp %30 : vector<8x128xf32>
      %cst_26 = arith.constant dense<0.000000e+00> : vector<8xf32>
      %32 = vector.multi_reduction <add>, %31, %cst_26 [1] : vector<8x128xf32> to vector<8xf32>
      %33 = vector.shape_cast %32 : vector<8xf32> to vector<8x1xf32>
      %34 = math.log %33 : vector<8x1xf32>
      %35 = vector.broadcast %34 : vector<8x1xf32> to vector<8x128xf32>
      %36 = arith.subf %30, %35 : vector<8x128xf32>
      %c0_27 = arith.constant 0 : index
      %37 = arith.index_cast %17 : i32 to index
      %c0_28 = arith.constant 0 : index
      %38 = vector.load %arg9[%c0_27, %37, %c0_28] : memref<1x64x128xf32, #tpu.memory_space<vmem>>, vector<1x8x128xf32>
      %39 = vector.shape_cast %38 : vector<1x8x128xf32> to vector<8x128xf32>
      %40 = vector.shape_cast %36 : vector<8x128xf32> to vector<1x8x128xf32>
      tpu.vector_store %arg9[%c0_27, %37, %c0_28], %40 {strides = array<i32>} : memref<1x64x128xf32, #tpu.memory_space<vmem>>, vector<1x8x128xf32>,
      %c8_i32_29 = arith.constant 8 : i32
      %41 = arith.muli %arg1, %c8_i32_29 : i32
      %42 = arith.addi %41, %arg12 : i32
      %c8_i32_30 = arith.constant 8 : i32
      %43 = arith.cmpi slt, %42, %c8_i32_30 : i32
      %44 = arith.select %43, %22, %arg13 : vector<8x128xf32>
      scf.yield %44 : vector<8x128xf32>
    }
    %c8_i32_18 = arith.constant 8 : i32
    %c0_19 = arith.constant 0 : index
    %c0_20 = arith.constant 0 : index
    %15 = vector.load %arg10[%c0_19, %c0_20] : memref<8x128xf32, #tpu.memory_space<vmem>>, vector<8x128xf32>
    tpu.vector_store %arg10[%c0_19, %c0_20], %14 {strides = array<i32>} : memref<8x128xf32, #tpu.memory_space<vmem>>, vector<8x128xf32>,
    return
  }
  func.func @transform_0(%arg0: i32, %arg1: i32) -> (i32, i32, i32) {
    %c1_i32 = arith.constant 1 : i32
    %0 = arith.muli %arg1, %c1_i32 : i32
    %1 = arith.addi %0, %arg0 : i32
    %c0_i32 = arith.constant 0 : i32
    %c0_i32_0 = arith.constant 0 : i32
    %c0_i32_1 = arith.constant 0 : i32
    return %1, %c0_i32, %c0_i32_0 : i32, i32, i32
  }
  func.func @transform_1(%arg0: i32, %arg1: i32) -> (i32, i32) {
    %c0_i32 = arith.constant 0 : i32
    %c0_i32_0 = arith.constant 0 : i32
    %c0_i32_1 = arith.constant 0 : i32
    return %c0_i32, %c0_i32_0 : i32, i32
  }
  func.func @transform_2(%arg0: i32, %arg1: i32) -> (i32, i32) {
    %c0_i32 = arith.constant 0 : i32
    %c0_i32_0 = arith.constant 0 : i32
    return %arg0, %c0_i32 : i32, i32
  }
  func.func @transform_3(%arg0: i32, %arg1: i32) -> (i32, i32) {
    %c0_i32 = arith.constant 0 : i32
    %c0_i32_0 = arith.constant 0 : i32
    %c0_i32_1 = arith.constant 0 : i32
    return %c0_i32, %c0_i32_0 : i32, i32
  }
  func.func @transform_4(%arg0: i32, %arg1: i32) -> (i32, i32) {
    %c0_i32 = arith.constant 0 : i32
    %c0_i32_0 = arith.constant 0 : i32
    %c0_i32_1 = arith.constant 0 : i32
    return %c0_i32, %c0_i32_0 : i32, i32
  }
  func.func @transform_5(%arg0: i32, %arg1: i32) -> (i32, i32) {
    %c0_i32 = arith.constant 0 : i32
    %c0_i32_0 = arith.constant 0 : i32
    %c0_i32_1 = arith.constant 0 : i32
    return %c0_i32, %c0_i32_0 : i32, i32
  }
  func.func @transform_6(%arg0: i32, %arg1: i32) -> (i32, i32) {
    %c0_i32 = arith.constant 0 : i32
    %c0_i32_0 = arith.constant 0 : i32
    return %arg0, %c0_i32 : i32, i32
  }
  func.func @transform_7(%arg0: i32, %arg1: i32) -> (i32, i32, i32) {
    %c1_i32 = arith.constant 1 : i32
    %0 = arith.muli %arg1, %c1_i32 : i32
    %1 = arith.addi %0, %arg0 : i32
    %c0_i32 = arith.constant 0 : i32
    %c0_i32_0 = arith.constant 0 : i32
    %c0_i32_1 = arith.constant 0 : i32
    return %1, %c0_i32, %c0_i32_0 : i32, i32, i32
  }
  func.func @transform_8(%arg0: i32, %arg1: i32) -> (i32, i32) {
    %c0_i32 = arith.constant 0 : i32
    %c0_i32_0 = arith.constant 0 : i32
    return %arg0, %c0_i32 : i32, i32
  }
}

</mosaic_0001>

<bundles_post_ra>
// kernel: tpu_custom_call.1
= control target key start
LH: loop header
LB: loop body
LE: loop exit
PB: predicated region body
PF: predicated region fallthrough
CT: control target
= control target key end

     0   :  { %14 = vsyncpa [#allocation4], 0  ;;  %s1046_s0 = inlined_call_operand.vmem [shape: bf16[1,64,16], index: 0, kind: input, shape index: {}]   ;;  %s1047_s1 = inlined_call_operand.vmem [shape: bf16[16,128], index: 1, kind: input, shape index: {}]   ;;  %s1048_s2 = inlined_call_operand.vmem [shape: f32[8,128], index: 2, kind: input, shape index: {}]   ;;  %s1049_s3 = inlined_call_operand.hbm [shape: f32[128,128], index: 3, kind: input, shape index: {}]   ;;  %s1050_s4 = inlined_call_operand.hbm [shape: bf16[128,128], index: 4, kind: input, shape index: {}]   ;;  %s1051_s5 = inlined_call_operand.vmem [shape: f32[1,128], index: 5, kind: input, shape index: {}]   ;;  %s1052_s6 = inlined_call_operand.vmem [shape: f32[8,128], index: 6, kind: input, shape index: {}]   ;;  %s1053_s7 = inlined_call_operand.hbm [shape: f32[1,64,128], index: 7, kind: output, shape index: {0}]   ;;  %s1054_s8 = inlined_call_operand.hbm [shape: f32[8,128], index: 8, kind: output, shape index: {1}]  }
   0x1   :  { %15 = vsyncpa [#allocation7], 0 }
   0x2   :  { %16 = vsyncpa [#allocation5], 0 }
   0x3   :  { %17 = vsyncpa [#allocation10], 0  ;;  %s783_s27 = smov [#allocation3]   ;;  %s671_s9 = scalar_lea.hbm %s1049_s3, 2048 }
   0x4   :  { %s36_s28 = sshll.u32 %s783_s27, 4  ;;  %p672_p0 = scmp.ne.s32.totalorder %s1049_s3, %s671_s9  ;;  %s37_s28 = int_to_ptr.vmem [resolvable:$true] %s36_s28 }
   0x5   :  { %p675_p1 = scmp.lt.u32.totalorder %s671_s9, %s1049_s3 }
   0x7   :  { %p677_p2 = pnand %p675_p1, %p672_p0 }
   0x9   :  { %680 = shalt.err (!%p677_p2)
}
   0xa   :  { %s681_s14 = scalar_lea.vmem %s37_s28, 2048  ;;  %p686_p4 = scmp.lt.s32.totalorder %s37_s28, %s37_s28 }
   0xb   :  { %p682_p3 = scmp.ne.s32.totalorder %s37_s28, %s681_s14  ;;  %p687_p5 = scmp.lt.s32.totalorder %s681_s14, %s681_s14 }
   0xd   :  { %p688_p6 = por %p687_p5, %p686_p4 }
   0xf   :  { %p689_p7 = pnand %p688_p6, %p682_p3 }
  0x11   :  { %692 = shalt.err (!%p689_p7)
}
  0x12   :  { %s784_s15 = smov 128   ;;  %s785_s16 = smov 8  }
  0x13   :  { %42 = dma.hbm_to_vmem [thread:$0]  %s1049_s3, 2048, %s37_s28, [#allocation4], %s784_s15, %s784_s15, %s785_s16  }
  0x14   :  { %s786_s19 = smov [#allocation6]   ;;  %s693_s23 = scalar_lea.hbm %s1050_s4, 1024 }
  0x15   :  { %s48_s20 = sshll.u32 %s786_s19, 4  ;;  %p694_p8 = scmp.ne.s32.totalorder %s1050_s4, %s693_s23  ;;  %s49_s20 = int_to_ptr.vmem [resolvable:$true] %s48_s20 }
  0x16   :  { %p697_p9 = scmp.lt.u32.totalorder %s693_s23, %s1050_s4 }
  0x18   :  { %p699_p10 = pnand %p697_p9, %p694_p8 }
  0x1a   :  { %702 = shalt.err (!%p699_p10)
}
  0x1b   :  { %s703_s29 = scalar_lea.vmem %s49_s20, 1024  ;;  %p708_p12 = scmp.lt.s32.totalorder %s49_s20, %s49_s20 }
  0x1c   :  { %p704_p11 = scmp.ne.s32.totalorder %s49_s20, %s703_s29  ;;  %p709_p13 = scmp.lt.s32.totalorder %s703_s29, %s703_s29 }
  0x1e   :  { %p710_p0 = por %p709_p13, %p708_p12 }
  0x20   :  { %p711_p1 = pnand %p710_p0, %p704_p11 }
  0x22   :  { %714 = shalt.err (!%p711_p1)
}
  0x23   :  { %s787_s3 = smov 64   ;;  %s788_s28 = smov 4  }
  0x24   :  { %54 = dma.hbm_to_vmem [thread:$0]  %s1050_s4, 1024, %s49_s20, [#allocation7], %s787_s3, %s787_s3, %s788_s28  }
  0x25   :  { %767 = dma.done.wait [#allocation4], 2048  }
  0x26   :  { %768 = vsyncadd [#allocation4], 4294965248 }
  0x27   :  { %769 = dma.done.wait [#allocation7], 1024  }
  0x28   :  { %770 = vsyncadd [#allocation7], 4294966272  ;;  %v869_v0 = vld [vmem:[%s1052_s6] sm:$0xff]   ;;  %v873_v2 = vld [vmem:[#allocation3 + $0x8] sm:$0xff]  ;;  %vm122_vm0 = vcmask 130048  }
  0x29   :  { %v871_v1 = vld [vmem:[#allocation3] sm:$0xff]  ;;  %85 = vst [vmem:[#allocation9] sm:$0xff] %v869_v0  ;;  %v876_v3 = vld [vmem:[#allocation3 + $0x10] sm:$0xff]  ;;  %v878_v4 = vld [vmem:[#allocation3 + $0x18] sm:$0xff] }
  0x2a   :  { %v880_v5 = vld [vmem:[#allocation3 + $0x20] sm:$0xff]  ;;  %v882_v6 = vld [vmem:[#allocation3 + $0x28] sm:$0xff]  ;;  %v884_v7 = vld [vmem:[#allocation3 + $0x30] sm:$0xff] }
  0x2b   :  { %v886_v8 = vld [vmem:[#allocation3 + $0x38] sm:$0xff]  ;;  %v888_v9 = vld [vmem:[#allocation3 + $0x40] sm:$0xff]  ;;  %v890_v10 = vld [vmem:[#allocation3 + $0x48] sm:$0xff] }
  0x2c   :  { %v892_v11 = vld [vmem:[#allocation3 + $0x50] sm:$0xff]  ;;  %v894_v12 = vld [vmem:[#allocation3 + $0x58] sm:$0xff]  ;;  %v896_v13 = vld [vmem:[#allocation3 + $0x60] sm:$0xff] }
  0x2d   :  { %v898_v14 = vld [vmem:[#allocation3 + $0x68] sm:$0xff]  ;;  %v900_v15 = vld [vmem:[#allocation3 + $0x70] sm:$0xff]  ;;  %v902_v16 = vld [vmem:[#allocation3 + $0x78] sm:$0xff] }
  0x2e   :  { %v904_v17 = vld [vmem:[#allocation6] sm:$0xf]  ;;  %v906_v18 = vld [vmem:[#allocation6 + $0x4] sm:$0xf]  ;;  %v908_v19 = vld [vmem:[#allocation6 + $0x8] sm:$0xf] }
  0x2f   :  { %v910_v20 = vld [vmem:[#allocation6 + $0xc] sm:$0xf]  ;;  %v912_v21 = vld [vmem:[#allocation6 + $0x10] sm:$0xf]  ;;  %v914_v22 = vld [vmem:[#allocation6 + $0x14] sm:$0xf] }
  0x30   :  { %v916_v23 = vld [vmem:[#allocation6 + $0x18] sm:$0xf]  ;;  %v918_v24 = vld [vmem:[#allocation6 + $0x1c] sm:$0xf]  ;;  %v920_v25 = vld [vmem:[#allocation6 + $0x20] sm:$0xf] }
  0x31   :  { %v922_v26 = vld [vmem:[#allocation6 + $0x24] sm:$0xf]  ;;  %v924_v27 = vld [vmem:[#allocation6 + $0x28] sm:$0xf]  ;;  %v926_v28 = vld [vmem:[#allocation6 + $0x2c] sm:$0xf] }
  0x32   :  { %v928_v29 = vld [vmem:[#allocation6 + $0x30] sm:$0xf]  ;;  %v930_v30 = vld [vmem:[#allocation6 + $0x34] sm:$0xf]  ;;  %v932_v31 = vld [vmem:[#allocation6 + $0x38] sm:$0xf] }
  0x33   :  { %v934_v32 = vld [vmem:[#allocation6 + $0x3c] sm:$0xf]  ;;  %v939_v33 = vld [vmem:[%s1051_s5] ss:$0 sm:$0xff]  ;;  %v664_v37 = vld [vmem:[%s1046_s0 + $0x10] sm:$0xff]  }
  0x34   :  { %v944_v34 = vld [vmem:[%s1048_s2] sm:$0xff]  ;;  %v665_v38 = vld [vmem:[%s1046_s0 + $0x8] sm:$0xff]   ;;  %550 = vmatprep.mubr.msk.bf16.mxu1 %vm122_vm0, %v664_v37  ;;  %v666_v39 = vld [vmem:[%s1046_s0 + $0x18] sm:$0xff]  }
  0x35   :  { %v662_v35 = vld [vmem:[%s1047_s1] sm:$0xff]  }
  0x36   :  { %v663_v36 = vld [vmem:[%s1046_s0] sm:$0xff]   ;;  %544 = vmatprep.subr.bf16.mxu0 %v662_v35  ;;  %633 = vmatprep.subr.bf16.mxu1 %v662_v35  ;;  %s964_s0 = smov 0  }
  0x37   :  { %545 = vmatpush3.bf16.msra.mxu0 %v662_v35  ;;  %634 = vmatpush3.bf16.msra.mxu1 %v662_v35 }
  0x38   :  { %546 = vmatprep.mubr.msk.bf16.mxu0 %vm122_vm0, %v663_v36 }
  0x3a   :  { %547 = vmatmul.mubr.msk.bf16.vlgmr.msra.gmra.mrb[0].mxu0 %vm122_vm0, %v665_v38  ;;  %551 = vmatmul.mubr.msk.bf16.vlgmr.msra.gmra.mrb[0].mxu1 %vm122_vm0, %v666_v39 }
 0x10d   :  { %v548_v40 = vpop.f32.mrb[0].mxu0  ;;  %v552_v41 = vpop.f32.mrb[0].mxu1 }
 0x10e   :  { %202 = vst [vmem:[#allocation2 + $0x10] sm:$0xff] %v548_v40  ;;  %206 = vst [vmem:[#allocation2 + $0x30] sm:$0xff] %v552_v41  ;;  %v169_v42 = vpop.f32.mrb[1].mxu0  ;;  %v185_v43 = vpop.f32.mrb[1].mxu1 }
 0x10f   :  { %200 = vst [vmem:[#allocation2] sm:$0xff] %v169_v42  ;;  %204 = vst [vmem:[#allocation2 + $0x20] sm:$0xff] %v185_v43  ;;  %v549_v44 = vpop.f32.mrb[2].mxu0  ;;  %v553_v45 = vpop.f32.mrb[2].mxu1 }
 0x110   :  { %203 = vst [vmem:[#allocation2 + $0x18] sm:$0xff] %v549_v44  ;;  %207 = vst [vmem:[#allocation2 + $0x38] sm:$0xff] %v553_v45  ;;  %v172_v46 = vpop.f32.mrb[3].mxu0  ;;  %v188_v47 = vpop.f32.mrb[3].mxu1 }
 0x111   :  { %201 = vst [vmem:[#allocation2 + $0x8] sm:$0xff] %v172_v46  ;;  %205 = vst [vmem:[#allocation2 + $0x28] sm:$0xff] %v188_v47 }
 0x112 LB: > { %v610_v48 = vpack.c.bf16 %v873_v2, %v871_v1  ;;  %v789_v49 = vmov 0.0|0.0   ;;  %v613_v50 = vpack.c.bf16 %v878_v4, %v876_v3  ;;  %vm790_vm1 = vmmov 0   ;;  %s503_s23 = sshll.u32 %s781_s0, 3  ;;  %p434_p2 = scmp.lt.s32.totalorder %s781_s0, 8  ;;  %s781_s0 = sphi %s964_s0, %s248_s0   ;;  %v777_v0 = vphi %v869_v0, %v1055_v0  }
 0x113   : > { %609 = vmatprep.subr.bf16.mxu0 %v789_v49  ;;  %v791_v51 = vmov 0.0   ;;  %v505_v52 = vcombine.low %v904_v17, %v906_v18  ;;  %v506_v53 = vcombine.low %v908_v19, %v910_v20  ;;  %v616_v54 = vpack.c.bf16 %v882_v6, %v880_v5  ;;  %s251_s25 = scalar_lea.vmem [#allocation2], %s503_s23  ;;  %s430_s26 = scalar_lea.vmem [#allocation8], %s503_s23 }
 0x114   : > { %611 = vmatpush3.bf16.msra.mxu0 %v610_v48  ;;  %586 = vmatprep.mubr.msk.f32.mxu0 %vm790_vm1, %v791_v51  ;;  %v507_v55 = vcombine.low %v912_v21, %v914_v22  ;;  %v619_v56 = vpack.c.bf16 %v886_v8, %v884_v7  ;;  %v508_v57 = vcombine.low %v916_v23, %v918_v24  ;;  %s435_s24 = scalar_select %p434_p2, 1, 0 }
 0x115   : > { %612 = vmatprep.subr.bf16.mxu0 %v789_v49  ;;  %589 = vmatprep.subr.bf16.mxu1 %v791_v51  ;;  %v622_v58 = vpack.c.bf16 %v890_v10, %v888_v9  ;;  %v509_v59 = vcombine.low %v920_v25, %v922_v26  ;;  %v625_v60 = vpack.c.bf16 %v894_v12, %v892_v11  ;;  %s248_s0 = sadd.s32 1, %s781_s0  }
 0x116   : > { %590 = vmatpush3.bf16.msra.mxu1 %v505_v52  ;;  %605 = vmatprep.mubr.msk.bf16.mxu1 %vm790_vm1, %v791_v51  ;;  %v510_v61 = vcombine.low %v924_v27, %v926_v28  ;;  %v628_v62 = vpack.c.bf16 %v898_v14, %v896_v13  ;;  %v511_v63 = vcombine.low %v928_v29, %v930_v30  ;;  %v436_v39 = vstv %s435_s24  ;;  %p245_p3 = scmp.ge.s32.totalorder %s248_s0, 8  }
 0x117   : > { %591 = vmatprep.subr.bf16.mxu1 %v791_v51  ;;  %v631_v35 = vpack.c.bf16 %v902_v16, %v900_v15  ;;  %v512_v36 = vcombine.low %v932_v31, %v934_v32  ;;  %vm437_vm2 = vcmp.eq.s32.totalorder %v436_v39, 1  ;;  %s792_s27 = smov (%p245_p3), [#allocation8]   ;;  %s793_s3 = smov (%p245_p3), [#allocation9]  }
 0x118   : > { %614 = vmatpush3.bf16.msra.mxu0 %v613_v50  ;;  %v252_v37 = vld [vmem:[%s251_s25] sm:$0xff]  ;;  %s449_s29 = sshll.u32 (%p245_p3), %s792_s27, 4  ;;  %s462_s28 = sshll.u32 (%p245_p3), %s793_s3, 4  ;;  %s450_s29 = int_to_ptr.vmem [resolvable:$true] %s449_s29  ;;  %s463_s28 = int_to_ptr.vmem [resolvable:$true] %s462_s28 }
 0x119   : > { %615 = vmatprep.subr.bf16.mxu0 %v789_v49  ;;  %v253_v38 = vadd.f32 %v252_v37, %v944_v34  ;;  %s715_s30 = scalar_lea.vmem (%p245_p3), %s450_s29, 1024  ;;  %p720_p5 = scmp.lt.s32.totalorder (%p245_p3), %s450_s29, %s450_s29 }
 0x11a   : > { %592 = vmatpush3.bf16.msra.mxu1 %v506_v53  ;;  %p716_p4 = scmp.ne.s32.totalorder (%p245_p3), %s450_s29, %s715_s30  ;;  %p721_p6 = scmp.lt.s32.totalorder (%p245_p3), %s715_s30, %s715_s30 }
 0x11b   : > { %593 = vmatprep.subr.bf16.mxu1 %v791_v51 }
 0x11c   : > { %617 = vmatpush3.bf16.msra.mxu0 %v616_v54  ;;  %p722_p7 = por (%p245_p3), %p721_p6, %p720_p5 }
 0x11d   : > { %618 = vmatprep.subr.bf16.mxu0 %v789_v49 }
 0x11e   : > { %594 = vmatpush3.bf16.msra.mxu1 %v507_v55  ;;  %p723_p8 = pnand (%p245_p3), %p722_p7, %p716_p4 }
 0x11f   : > { %595 = vmatprep.subr.bf16.mxu1 %v791_v51 }
 0x120   : > { %620 = vmatpush3.bf16.msra.mxu0 %v619_v56 }
 0x121   : > { %621 = vmatprep.subr.bf16.mxu0 %v789_v49 }
 0x122   : > { %596 = vmatpush3.bf16.msra.mxu1 %v508_v57 }
 0x123   : > { %597 = vmatprep.subr.bf16.mxu1 %v791_v51 }
 0x124   : > { %623 = vmatpush3.bf16.msra.mxu0 %v622_v58 }
 0x125   : > { %624 = vmatprep.subr.bf16.mxu0 %v789_v49 }
 0x126   : > { %598 = vmatpush3.bf16.msra.mxu1 %v509_v59 }
 0x127   : > { %599 = vmatprep.subr.bf16.mxu1 %v791_v51 }
 0x128   : > { %626 = vmatpush3.bf16.msra.mxu0 %v625_v60 }
 0x129   : > { %627 = vmatprep.subr.bf16.mxu0 %v789_v49 }
 0x12a   : > { %600 = vmatpush3.bf16.msra.mxu1 %v510_v61 }
 0x12b   : > { %601 = vmatprep.subr.bf16.mxu1 %v791_v51 }
 0x12c   : > { %629 = vmatpush3.bf16.msra.mxu0 %v628_v62 }
 0x12d   : > { %630 = vmatprep.subr.bf16.mxu0 %v789_v49 }
 0x12e   : > { %602 = vmatpush3.bf16.msra.mxu1 %v511_v63 }
 0x12f   : > { %603 = vmatprep.subr.bf16.mxu1 %v791_v51 }
 0x130   : > { %632 = vmatpush3.bf16.msra.mxu0 %v631_v35 }
 0x132   : > { %604 = vmatpush3.bf16.msra.mxu1 %v512_v36 }
 0x133   : > { %587 = vmatmul.mubr.f32.vlgmr.msra.gmra.mrb[0].mxu0 %v777_v0 }
 0x206   : > { %v320_v40 = vpop.f32.mrb[0].mxu0 }
 0x207   : > { %v324_v41 = vadd.f32 %v320_v40, %v253_v38  ;;  %v588_v42 = vpop.f32.mrb[1].mxu0 }
 0x209   : > { %v325_v43 = vpack.c.bf16 %v324_v41, %v324_v41  ;;  %v438_v44 = vsel %vm437_vm2, %v324_v41, %v777_v0  }
 0x20a   :  { %439 = vst [vmem:[#allocation9] sm:$0xff] (%p245_p3), %v438_v44 }
 0x20b   : > { %606 = vmatmul.mubr.bf16.vlgmr.msra.gmra.mrb[0].mxu1 %v325_v43 }
 0x2de   : > { %v414_v45 = vpop.f32.mrb[0].mxu1 }
 0x2df   : > { %v415_v46 = vadd.f32 %v939_v33, %v414_v45  ;;  %v607_v47 = vpop.f32.mrb[1].mxu1 }
 0x2e0   : > { %v417_v48 = vpop.f32.mrb[2].mxu1 }
 0x2e1   : > { %420 = vmax.xlane.f32.xlu0 %v415_v46  ;;  %v608_v49 = vpop.f32.mrb[3].mxu1 }
 0x36e   : > { %v421_v50 = vpop.xlane.xlu0 %420 }
 0x36f   : > { %v422_v51 = vsub.f32 %v415_v46, %v421_v50 }
 0x371   : > { %v423_v52 = vmul.f32 1.442695, %v422_v51 }
 0x373   : > { %667 = vpow2.f32 %v423_v52 }
 0x37d   : > { %v668_v53 = vpop.eup %667 }
 0x37e   : > { %425 = vadd.xlane.f32.xlu0 %v668_v53 }
 0x40b   : > { %v426_v54 = vpop.xlane.xlu0 %425 }
 0x40c   : > { %669 = vlog2.f32 %v426_v54 }
 0x415   :  { %247 = sbr.rel (!%p245_p3) target bundleno = 274 (0x112), region = 81 }
 0x416   : > { %v670_v55 = vpop.eup %669 }
 0x417   : > { %v428_v56 = vmul.f32 0.6931472, %v670_v55 }
 0x419   : > { %v429_v0 = vsub.f32 %v422_v51, %v428_v56 }
 0x41b   : > { %431 = vst [vmem:[%s430_s26] sm:$0xff] %v429_v0  ;;  %v1055_v0 = vmov %v438_v44 }
 0x41c   :  { %726 = shalt.err (!%p723_p8)
}
 0x41d   :  { %s727_s11 = scalar_lea.hbm %s1053_s7, 1024 }
 0x41e   :  { %p728_p9 = scmp.ne.s32.totalorder %s1053_s7, %s727_s11  ;;  %p731_p10 = scmp.lt.u32.totalorder %s727_s11, %s1053_s7 }
 0x420   :  { %p733_p11 = pnand %p731_p10, %p728_p9 }
 0x422   :  { %736 = shalt.err (!%p733_p11)
}
 0x423   :  { %455 = dma.vmem_to_hbm [thread:$0]  %s450_s29, 1024, %s1053_s7, [#allocation5], %s784_s15, %s784_s15, %s785_s16  }
 0x424   :  { %s737_s18 = scalar_lea.vmem %s463_s28, 128  ;;  %p742_p13 = scmp.lt.s32.totalorder %s463_s28, %s463_s28 }
 0x425   :  { %p738_p12 = scmp.ne.s32.totalorder %s463_s28, %s737_s18  ;;  %p743_p0 = scmp.lt.s32.totalorder %s737_s18, %s737_s18 }
 0x427   :  { %p744_p1 = por %p743_p0, %p742_p13 }
 0x429   :  { %p745_p2 = pnand %p744_p1, %p738_p12 }
 0x42b   :  { %748 = shalt.err (!%p745_p2)
}
 0x42c   :  { %s749_s21 = scalar_lea.hbm %s1054_s8, 128 }
 0x42d   :  { %p750_p3 = scmp.ne.s32.totalorder %s1054_s8, %s749_s21  ;;  %p753_p4 = scmp.lt.u32.totalorder %s749_s21, %s1054_s8 }
 0x42f   :  { %p755_p5 = pnand %p753_p4, %p750_p3 }
 0x431   :  { %758 = shalt.err (!%p755_p5)
}
 0x432   :  { %465 = dma.vmem_to_hbm [thread:$0]  %s463_s28, 128, %s1054_s8, [#allocation10]  }
 0x433   :  { %771 = dma.done.wait [#allocation5], 1024  }
 0x434   :  { %772 = vsyncadd [#allocation5], 4294966272 }
 0x435   :  { %773 = dma.done.wait [#allocation10], 128  }
 0x436   :  { %774 = vsyncadd [#allocation10], 4294967168 }
 0x437   :  { %472 = vsyncpa [#allocation4], 1 }
 0x438   :  { %473 = vsyncpa [#allocation7], 1 }
 0x439   :  { %474 = vsyncpa [#allocation5], 1 }
 0x43a   :  { %475 = vsyncpa [#allocation10], 1 }

</bundles_post_ra>
